<compile_context>
chip_gen: v5e
topology: v5e:2x2
jax: 0.10.0
libtpu: 0.0.40
codegen_flags: <defaults>
</compile_context>

<pallas_src>
import jax
import jax.numpy as jnp
from jax.experimental import pallas as pl
from jax.experimental.pallas import tpu as pltpu


def _mm_cat_kernel(x_ref, y_ref, o_ref):
    # VPU-only contraction over K (K is tiny and static).
    # x_ref: (M, K), y_ref: (K, N) -> v: (M, N), all inside one vreg.
    K = x_ref.shape[1]
    v = x_ref[:, 0:1] * y_ref[0:1, :]
    for k in range(1, K):  # unrolled at trace time (K == 2)
        v = v + x_ref[:, k : k + 1] * y_ref[k : k + 1, :]
    # torch.cat([v1, v2, v3], 1) with v1 == v2 == v3  ==  replicate columns.
    o_ref[...] = jnp.concatenate([v, v, v], axis=1).astype(o_ref.dtype)


def mm_cat3(x, y):
    M, K = x.shape
    K2, N = y.shape
    assert K == K2
    out_shape = jax.ShapeDtypeStruct((M, 3 * N), x.dtype)

    itemsize = jnp.dtype(x.dtype).itemsize
    cost = pl.CostEstimate(
        flops=2 * M * K * N,
        transcendentals=0,
        bytes_accessed=(M * K + K * N + M * 3 * N) * itemsize,
    )

    return pl.pallas_call(
        _mm_cat_kernel,
        out_shape=out_shape,
        in_specs=[
            pl.BlockSpec((M, K), lambda: (0, 0),
                         memory_space=pltpu.MemorySpace.VMEM),
            pl.BlockSpec((K, N), lambda: (0, 0),
                         memory_space=pltpu.MemorySpace.VMEM),
        ],
        out_specs=pl.BlockSpec((M, 3 * N), lambda: (0, 0),
                               memory_space=pltpu.MemorySpace.VMEM),
        cost_estimate=cost,
    )(x, y)


if __name__ == "__main__":
    key = jax.random.PRNGKey(0)
    kx, ky = jax.random.split(key)
    # Shapes implied by the module: x = randn(3, 2), y = randn(2, 1)
    x = jax.random.normal(kx, (3, 2), dtype=jnp.float32)
    y = jax.random.normal(ky, (2, 1), dtype=jnp.float32)

    out = mm_cat3(x, y)
    jax.block_until_ready(out)

    # Reference check against plain JAX.
    v = x @ y
    ref = jnp.concatenate([v, v, v], axis=1)
    assert out.shape == (3, 3)
    assert jnp.allclose(out, ref, atol=1e-5, rtol=1e-5)

    print("KERNEL_OK")
</pallas_src>

<mosaic_0001>
module attributes {stable_mosaic.version = 11 : i64} {
  func.func @_mm_cat_kernel(%arg0: memref<3x2xf32, #tpu.memory_space<vmem>>, %arg1: memref<2x1xf32, #tpu.memory_space<vmem>>, %arg2: memref<3x3xf32, #tpu.memory_space<vmem>>) attributes {dimension_semantics = [], scalar_prefetch = 0 : i64, scratch_operands = 0 : i64, tpu.core_type = #tpu.core_type<tc>} {
    %c0 = arith.constant 0 : index
    %c0_0 = arith.constant 0 : index
    %0 = vector.load %arg0[%c0, %c0_0] : memref<3x2xf32, #tpu.memory_space<vmem>>, vector<3x1xf32>
    %c0_1 = arith.constant 0 : index
    %c0_2 = arith.constant 0 : index
    %1 = vector.load %arg1[%c0_1, %c0_2] : memref<2x1xf32, #tpu.memory_space<vmem>>, vector<1x1xf32>
    %2 = vector.broadcast %1 : vector<1x1xf32> to vector<3x1xf32>
    %3 = arith.mulf %0, %2 : vector<3x1xf32>
    %c0_3 = arith.constant 0 : index
    %c1 = arith.constant 1 : index
    %4 = vector.load %arg0[%c0_3, %c1] : memref<3x2xf32, #tpu.memory_space<vmem>>, vector<3x1xf32>
    %c1_4 = arith.constant 1 : index
    %c0_5 = arith.constant 0 : index
    %5 = vector.load %arg1[%c1_4, %c0_5] : memref<2x1xf32, #tpu.memory_space<vmem>>, vector<1x1xf32>
    %6 = vector.broadcast %5 : vector<1x1xf32> to vector<3x1xf32>
    %7 = arith.mulf %4, %6 : vector<3x1xf32>
    %8 = arith.addf %3, %7 : vector<3x1xf32>
    %9 = tpu.concatenate %8, %8, %8 in 1 : vector<3x1xf32>, vector<3x1xf32>, vector<3x1xf32> -> vector<3x3xf32>
    %c0_6 = arith.constant 0 : index
    %c0_7 = arith.constant 0 : index
    %10 = vector.load %arg2[%c0_6, %c0_7] : memref<3x3xf32, #tpu.memory_space<vmem>>, vector<3x3xf32>
    tpu.vector_store %arg2[%c0_6, %c0_7], %9 {strides = array<i32>} : memref<3x3xf32, #tpu.memory_space<vmem>>, vector<3x3xf32>,
    return
  }
}

</mosaic_0001>

<bundles_post_ra>
// kernel: tpu_custom_call.1
= control target key start
LH: loop header
LB: loop body
LE: loop exit
PB: predicated region body
PF: predicated region fallthrough
CT: control target
= control target key end

     0   :  { %s120_s0 = inlined_call_operand.vmem [shape: f32[3,2], index: 0, kind: input, shape index: {}]   ;;  %s121_s1 = inlined_call_operand.vmem [shape: f32[2,1], index: 1, kind: input, shape index: {}]   ;;  %s122_s2 = inlined_call_operand.hbm [shape: f32[3,3], index: 2, kind: output, shape index: {}]  }
   0x1   :  { %v61_v0 = vld [vmem:[%s121_s1 + $0x1] ss:$0 sm:$0xff] }
   0x2   :  { %7 = vsyncpa [#allocation3], 0  ;;  %s89_s11 = smov 1   ;;  %v12_v1 = vld [vmem:[%s120_s0] sm:$0x7]  ;;  %s90_s14 = smov 127  }
   0x3   :  { %19 = vrot.lane.b32.xlu0 %v61_v0, %s89_s11  ;;  %v62_v4 = vld [vmem:[%s121_s1] ss:$0 sm:$0xff]  ;;  %s91_s17 = smov 2   ;;  %vm35_vm0 = vcmask 7168   ;;  %s92_s18 = smov [#allocation2]   ;;  %vm37_vm1 = vcmask 15360  }
   0x4   :  { %v15_v5 = vmul.f32 %v62_v4, %v12_v1  ;;  %s46_s19 = sshll.u32 %s92_s18, 4  ;;  %s48_s21 = sshll.u32 %s122_s2, 4  ;;  %vm39_vm2 = vcmask 18432   ;;  %s47_s19 = int_to_ptr.vmem [resolvable:$true] %s46_s19  ;;  %s49_s21 = int_to_ptr.hbm [resolvable:$true] %s48_s21 }
  0x75   :  { %v20_v2 = vpop.permute.xlu0 %19 }
  0x76   :  { %v22_v3 = vmul.f32 %v20_v2, %v12_v1 }
  0x78   :  { %24 = vrot.lane.b32.xlu0 %v22_v3, %s90_s14 }
  0xea   :  { %v25_v6 = vpop.permute.xlu0 %24 }
  0xeb   :  { %v27_v7 = vadd.f32 %v25_v6, %v15_v5 }
  0xed   :  { %29 = vrot.lane.b32.xlu1 %v27_v7, %s89_s11 }
  0xf5   :  { %32 = vrot.lane.b32.xlu1 %v27_v7, %s91_s17 }
 0x15f   :  { %v30_v8 = vpop.permute.xlu1 %29 }
 0x160   :  { %v36_v9 = vsel %vm35_vm0, %v27_v7, %v30_v8 }
 0x167   :  { %v33_v10 = vpop.permute.xlu1 %32 }
 0x168   :  { %v38_v11 = vsel %vm37_vm1, %v36_v9, %v33_v10 }
 0x169   :  { %40 = vst.msk [vmem:[#allocation2] sm:$0x7] %vm39_vm2, %v38_v11 }
 0x16a   :  { %51 = dma.vmem_to_hbm [thread:$0]  %s47_s19, 64, %s49_s21, [#allocation3]  }
 0x16b   :  { %87 = dma.done.wait [#allocation3], 64  }
 0x16c   :  { %88 = vsyncadd [#allocation3], 4294967232 }
 0x16d   :  { %56 = vsyncpa [#allocation3], 1 }

</bundles_post_ra>
